<compile_context>
chip_gen: v5e
topology: v5e:2x2
jax: 0.10.0
libtpu: 0.0.40
codegen_flags: <defaults>
</compile_context>

<pallas_src>
import functools

import numpy as np
import jax
import jax.numpy as jnp
from jax import lax
from jax.experimental import pallas as pl
from jax.experimental.pallas import tpu as pltpu


def _probe_roll_sign():
    """+1 if pltpu.roll follows jnp.roll semantics (out[i] = x[i - shift]),
    -1 if the hardware rotate goes the other way.  Probed once at import time
    with a multi-vreg 2-D lane roll (same rank/axis as the kernel's shifts)."""
    shift = 130  # > one vreg of lanes -> exercises the cross-vreg path

    def probe(x_ref, o_ref):
        o_ref[...] = pltpu.roll(x_ref[...], shift, 1)

    x = jnp.tile(lax.iota(jnp.float32, 512)[None, :], (8, 1))
    y = pl.pallas_call(
        probe, out_shape=jax.ShapeDtypeStruct((8, 512), jnp.float32))(x)
    if bool(jnp.array_equal(y, jnp.roll(x, shift, axis=1))):
        return 1
    if bool(jnp.array_equal(y, jnp.roll(x, -shift, axis=1))):
        return -1
    raise AssertionError("pltpu.roll convention probe failed")


_ROLL_SIGN = _probe_roll_sign()


@functools.lru_cache(maxsize=None)
def _interior_mask_np(h, w):
    """f32 (1, 3*h*w) mask: 1 on interior pixels, 0 on border rows/cols,
    repeated for the 3 colour channels (channels are consecutive lane slabs)."""
    m = np.zeros((h, w), np.float32)
    if h > 2 and w > 2:
        m[1:h - 1, 1:w - 1] = 1.0
    return np.tile(m.reshape(1, h * w), (1, 3))


def _pick_batch_block(n, elem_bytes, budget):
    """Batch rows per grid step.

    Targets ~`budget` bytes of HBM payload per step (amortizes ~0.35 us/step
    overhead; ~85% of HBM roofline needs multi-MiB steps) while keeping the
    block's sublane dim either equal to N or a multiple of 8 so the (8,128)
    tiling rule holds.  The grid uses cdiv, so N need not divide evenly."""
    fit = max(1, int(budget) // int(elem_bytes))
    if fit >= n:
        return n                       # whole batch in one (or few) steps
    if fit >= 8:
        return (fit // 8) * 8          # multiple of 8 -> dense sublanes
    # TODO(synk): frames too large for >= 8 batch rows per step (and the
    # small-N / huge-frame case that wants >= 4 grid steps on v7x) need a
    # row-tiled grid with a 1-row halo via manual make_async_copy; fall back
    # to 8 rows (or the whole tiny batch) here.
    return min(8, n)


def _make_kernel(h, w, out_lanes, roll_sign):
    hw = h * w
    lanes = 3 * hw

    def shift_of(d):
        # out[p] = v[p + d]   (jnp.roll convention: out = roll(v, -d))
        return (-roll_sign * d) % lanes

    def kernel(mask_ref, x_ref, out_ref, gx_ref, gy_ref):
        x = x_ref[...]                                    # (bb, 3*hw) f32

        def tap(v, d):
            return pltpu.roll(v, shift_of(d), 1) if d else v

        # Separable 3x3 Sobel (6 rolls total, all on the XLU slot).
        xr = tap(x, 1)                                    # x(r, c+1)
        xl = tap(x, -1)                                   # x(r, c-1)
        dx = xr - xl
        s = xr + xl + 2.0 * x
        gx = tap(dx, -w) + 2.0 * dx + tap(dx, w)          # Sobel-x
        gy = tap(s, w) - tap(s, -w)                       # Sobel-y

        # Zero border rows/cols (reference semantics); this also kills every
        # roll wrap-around.  Only valid for the 3x3/pad=1 stencil (|shift|<=w+1).
        m = jnp.broadcast_to(mask_ref[...], x.shape)      # broadcast once
        gx = gx * m
        gy = gy * m

        mag = jnp.sqrt(gx * gx + gy * gy) * 0.5           # sqrt -> EUP
        mean_c = (mag[:, 0:hw] + mag[:, hw:2 * hw]
                  + mag[:, 2 * hw:3 * hw]) * (1.0 / 3.0)

        gx_ref[...] = gx
        gy_ref[...] = gy
        if out_lanes == hw:                               # single-channel out
            out_ref[...] = mean_c
        else:                                             # repeat to 3 channels
            out_ref[...] = jnp.concatenate([mean_c, mean_c, mean_c], axis=1)

    return kernel


def grad_img_v1(x, *, single_channel_out=False, step_bytes=4 << 20):
    """x: (N, 3, H, W) -> (out, grd_x, grd_y).

    `out` is (N, 3, H, W) (matching the PyTorch module) unless
    single_channel_out=True, in which case the 3 identical channels are not
    written and `out` is (N, 1, H, W) (~17% less HBM writeback for consumers
    that can broadcast)."""
    n, c, h, w = x.shape
    assert c == 3, "Grad_Img_v1 expects 3 input channels"
    hw = h * w
    lanes = 3 * hw
    out_c = 1 if single_channel_out else 3
    out_lanes = out_c * hw

    xf = x.astype(jnp.float32).reshape(n, lanes)          # lane-dense, free
    mask = jnp.asarray(_interior_mask_np(h, w))           # (1, 3*hw) f32

    elem_bytes = (3 + out_c + 3 + 3) * hw * 4             # 1 input + 3 outputs
    bb = _pick_batch_block(n, elem_bytes, step_bytes)
    grid = (pl.cdiv(n, bb),)                              # ragged last block OK

    img_blk = pl.BlockSpec((bb, lanes), lambda i: (i, 0))
    out_blk = pl.BlockSpec((bb, out_lanes), lambda i: (i, 0))
    mask_blk = pl.BlockSpec((1, lanes), lambda i: (0, 0))  # grid-invariant

    def sd(l):
        return jax.ShapeDtypeStruct((n, l), jnp.float32)

    # VMEM budget: double-buffered pipelined operands + headroom for the ~6-8
    # materialized roll/stencil temporaries (each <= one input block).
    blk_bytes = bb * elem_bytes
    vmem_limit = int(min(32 << 20,
                         max(4 << 20,
                             2 * (blk_bytes + lanes * 4) + 8 * bb * lanes * 4)))

    out, gx, gy = pl.pallas_call(
        _make_kernel(h, w, out_lanes, _ROLL_SIGN),
        out_shape=(sd(out_lanes), sd(lanes), sd(lanes)),
        grid_spec=pltpu.PrefetchScalarGridSpec(
            num_scalar_prefetch=0,
            grid=grid,
            in_specs=[mask_blk, img_blk],
            out_specs=[out_blk, img_blk, img_blk],
        ),
        compiler_params=pltpu.CompilerParams(
            dimension_semantics=("parallel",),
            vmem_limit_bytes=vmem_limit,
        ),
    )(mask, xf)

    return (out.reshape(n, out_c, h, w),
            gx.reshape(n, 3, h, w),
            gy.reshape(n, 3, h, w))


def _reference(x):
    """Pure-JAX reference using the actual conv weights from __init__."""
    conv_x = jnp.array([[-1.0, 0, 1], [-2, 0, 2], [-1, 0, 1]], jnp.float32)
    conv_y = jnp.array([[-1.0, -2, -1], [0, 0, 0], [1, 2, 1]], jnp.float32)
    kernel_x = jnp.zeros((3, 3, 3, 3), jnp.float32)
    kernel_y = jnp.zeros((3, 3, 3, 3), jnp.float32)
    for ch in range(3):
        kernel_x = kernel_x.at[ch, ch].set(conv_x)
        kernel_y = kernel_y.at[ch, ch].set(conv_y)
    dn = lax.conv_dimension_numbers(x.shape, kernel_x.shape,
                                    ("NCHW", "OIHW", "NCHW"))
    gx = lax.conv_general_dilated(x, kernel_x, (1, 1), ((1, 1), (1, 1)),
                                  dimension_numbers=dn)
    gy = lax.conv_general_dilated(x, kernel_y, (1, 1), ((1, 1), (1, 1)),
                                  dimension_numbers=dn)
    H, W = x.shape[2], x.shape[3]
    gx = gx.at[:, :, [0, H - 1], :].set(0.0).at[:, :, :, [0, W - 1]].set(0.0)
    gy = gy.at[:, :, [0, H - 1], :].set(0.0).at[:, :, :, [0, W - 1]].set(0.0)
    out = jnp.sqrt(gx ** 2 + gy ** 2) / 2.0
    out = jnp.mean(out, axis=1, keepdims=True)
    out = jnp.tile(out, (1, 3, 1, 1))
    return out, gx, gy


if __name__ == "__main__":
    def check(x, **kw):
        out, gx, gy = grad_img_v1(x, **kw)
        jax.block_until_ready((out, gx, gy))
        out_r, gx_r, gy_r = _reference(x)
        if kw.get("single_channel_out"):
            out_r = out_r[:, :1]
        assert jnp.allclose(out, out_r, atol=1e-5, rtol=1e-5)
        assert jnp.allclose(gx, gx_r, atol=1e-5, rtol=1e-5)
        assert jnp.allclose(gy, gy_r, atol=1e-5, rtol=1e-5)

    # primary small test (square image, whole batch in one step)
    x = jax.random.normal(jax.random.PRNGKey(0), (2, 3, 16, 16),
                          dtype=jnp.float32)
    check(x)

    # non-square guard for the flattened roll offsets (H != W)
    x2 = jax.random.normal(jax.random.PRNGKey(0), (2, 3, 16, 24),
                           dtype=jnp.float32)
    check(x2)

    # cdiv grid with a ragged last block: 12 images forced into 8-row blocks
    # -> grid of 2 (exercises multiple-of-8 blocks + tail write masking)
    x3 = jax.random.normal(jax.random.PRNGKey(1), (12, 3, 16, 16),
                           dtype=jnp.float32)
    check(x3, step_bytes=100_000)

    # single-channel `out` writeback option (v5e/v6e HBM-traffic lever)
    check(x, single_channel_out=True)

    print("KERNEL_OK")
</pallas_src>

<mosaic_0001>
module attributes {stable_mosaic.version = 11 : i64} {
  func.func @probe(%arg0: memref<8x512xf32, #tpu.memory_space<vmem>>, %arg1: memref<8x512xf32, #tpu.memory_space<vmem>>) attributes {dimension_semantics = [], scalar_prefetch = 0 : i64, scratch_operands = 0 : i64, tpu.core_type = #tpu.core_type<tc>} {
    %c0 = arith.constant 0 : index
    %c0_0 = arith.constant 0 : index
    %0 = vector.load %arg0[%c0, %c0_0] : memref<8x512xf32, #tpu.memory_space<vmem>>, vector<8x512xf32>
    %c130_i32 = arith.constant 130 : i32
    %1 = tpu.dynamic_rotate %0 by %c130_i32 dim 1 : vector<8x512xf32>, i32 -> vector<8x512xf32>
    %c0_1 = arith.constant 0 : index
    %c0_2 = arith.constant 0 : index
    %2 = vector.load %arg1[%c0_1, %c0_2] : memref<8x512xf32, #tpu.memory_space<vmem>>, vector<8x512xf32>
    tpu.vector_store %arg1[%c0_1, %c0_2], %1 {strides = array<i32>} : memref<8x512xf32, #tpu.memory_space<vmem>>, vector<8x512xf32>,
    return
  }
}

</mosaic_0001>

<bundles_post_ra>
// kernel: tpu_custom_call.1
= control target key start
LH: loop header
LB: loop body
LE: loop exit
PB: predicated region body
PF: predicated region fallthrough
CT: control target
= control target key end

     0   :  { %6 = vsyncpa [#allocation3], 0  ;;  %s137_s0 = inlined_call_operand.hbm [shape: f32[8,512], index: 0, kind: input, shape index: {}]   ;;  %s138_s1 = inlined_call_operand.hbm [shape: f32[8,512], index: 1, kind: output, shape index: {}]  }
   0x1   :  { %7 = vsyncpa [#allocation4], 0  ;;  %s13_s8 = sshll.u32 %s137_s0, 4  ;;  %s118_s9 = smov [#allocation2]   ;;  %s14_s8 = int_to_ptr.hbm [resolvable:$true] %s13_s8 }
   0x2   :  { %s15_s10 = sshll.u32 %s118_s9, 4  ;;  %s16_s10 = int_to_ptr.vmem [resolvable:$true] %s15_s10 }
   0x3   :  { %18 = dma.hbm_to_vmem [thread:$0]  %s14_s8, 512, %s16_s10, [#allocation3]  }
   0x4   :  { %114 = dma.done.wait [#allocation3], 512  }
   0x5   :  { %115 = vsyncadd [#allocation3], 4294966784  ;;  %v25_v0 = vld [vmem:[#allocation2 + $0x10] sm:$0xff]  ;;  %v23_v1 = vld [vmem:[#allocation2] sm:$0xff]  ;;  %s119_s11 = smov 2   ;;  %v35_v4 = vlaneseq  ;;  %s120_s0 = smov [#allocation5]  }
   0x6   :  { %31 = vrot.lane.b32.xlu1 %v25_v0, %s119_s11  ;;  %27 = vrot.lane.b32.xlu0 %v23_v1, %s119_s11  ;;  %v26_v2 = vld [vmem:[#allocation2 + $0x18] sm:$0xff]  ;;  %v24_v3 = vld [vmem:[#allocation2 + $0x8] sm:$0xff]  ;;  %s51_s12 = sshll.u32 %s120_s0, 4  ;;  %s53_s15 = sshll.u32 %s138_s1, 4  ;;  %s52_s12 = int_to_ptr.vmem [resolvable:$true] %s51_s12  ;;  %s54_s15 = int_to_ptr.hbm [resolvable:$true] %s53_s15 }
   0x7   :  { %v36_v7 = vand.u32 127, %v35_v4 }
   0x9   :  { %vm37_vm0 = vcmp.lt.s32.totalorder %v36_v7, 2 }
   0xe   :  { %33 = vrot.lane.b32.xlu1 %v26_v2, %s119_s11  ;;  %29 = vrot.lane.b32.xlu0 %v24_v3, %s119_s11 }
  0x78   :  { %v32_v5 = vpop.permute.xlu1 %31  ;;  %v28_v6 = vpop.permute.xlu0 %27 }
  0x80   :  { %v34_v8 = vpop.permute.xlu1 %33  ;;  %v30_v9 = vpop.permute.xlu0 %29 }
  0x81   :  { %v38_v10 = vsel %vm37_vm0, %v32_v5, %v34_v8  ;;  %v41_v11 = vsel %vm37_vm0, %v34_v8, %v28_v6  ;;  %v40_v12 = vsel %vm37_vm0, %v28_v6, %v30_v9  ;;  %v39_v13 = vsel %vm37_vm0, %v30_v9, %v32_v5 }
  0x82   :  { %42 = vst [vmem:[#allocation5] sm:$0xff] %v38_v10 }
  0x83   :  { %43 = vst [vmem:[#allocation5 + $0x8] sm:$0xff] %v41_v11 }
  0x84   :  { %44 = vst [vmem:[#allocation5 + $0x10] sm:$0xff] %v40_v12 }
  0x85   :  { %45 = vst [vmem:[#allocation5 + $0x18] sm:$0xff] %v39_v13 }
  0x86   :  { %56 = dma.vmem_to_hbm [thread:$0]  %s52_s12, 512, %s54_s15, [#allocation4]  }
  0x87   :  { %116 = dma.done.wait [#allocation4], 512  }
  0x88   :  { %117 = vsyncadd [#allocation4], 4294966784 }
  0x89   :  { %61 = vsyncpa [#allocation3], 1 }
  0x8a   :  { %62 = vsyncpa [#allocation4], 1 }

</bundles_post_ra>
